<compile_context>
chip_gen: v7x
topology: tpu7x:2x2x1
jax: 0.10.0
libtpu: 0.0.40
codegen_flags: <defaults>
</compile_context>

<pallas_src>
from typing import NamedTuple

import jax
import jax.numpy as jnp
from jax.experimental import pallas as pl
from jax.experimental.pallas import tpu as pltpu


def _round_up(x, m):
    return ((x + m - 1) // m) * m


def _vmem_capacity_bytes():
    """Physical VMEM per TensorCore (64 MiB on v7x, 128 MiB on v5e/v6e)."""
    try:
        return int(pltpu.get_tpu_info().vmem_capacity_bytes)
    except Exception:
        return 64 << 20  # conservative (v7x) default


# ---------------------------------------------------------------------------
# Kernel
# ---------------------------------------------------------------------------
def generator_kernel(z_ref, w1_ref, b1_ref, w2_ref, b2_ref, w3_ref, b3_ref,
                     out_ref):
    """Fused 3-layer MLP on one batch tile.

    z_ref: (TB, Lp) bf16   w*: bf16 (in, out)   b*: (1, out) f32
    out_ref: (TB, Ip) bf16
    """
    z = z_ref[...]  # bf16, straight into the MXU

    # Layer 1: Linear + ReLU   (Dropout == identity in eval mode)
    h1 = jnp.dot(z, w1_ref[...], preferred_element_type=jnp.float32)
    h1 = jnp.maximum(h1 + b1_ref[...], 0.0)

    # Layer 2: Linear + ReLU   (Dropout == identity in eval mode)
    h2 = jnp.dot(h1.astype(jnp.bfloat16), w2_ref[...],
                 preferred_element_type=jnp.float32)
    h2 = jnp.maximum(h2 + b2_ref[...], 0.0)

    # Layer 3: Linear + Tanh (tanh in f32, bounded output stored as bf16)
    h3 = jnp.dot(h2.astype(jnp.bfloat16), w3_ref[...],
                 preferred_element_type=jnp.float32)
    out_ref[...] = jnp.tanh(h3 + b3_ref[...]).astype(out_ref.dtype)


# ---------------------------------------------------------------------------
# Parameter preparation (done ONCE, outside the hot path)
# ---------------------------------------------------------------------------
class PreparedParams(NamedTuple):
    w1: jax.Array
    b1: jax.Array
    w2: jax.Array
    b2: jax.Array
    w3: jax.Array
    b3: jax.Array
    L: int
    H: int
    I: int
    Lp: int
    Hp: int
    Ip: int


def prepare_generator_params(params):
    """Pad feature dims to multiples of 128 and cast weights to bf16, once.

    Zero-padding is semantics-preserving: padded weight rows/cols and padded
    bias entries are zero, so padded activations stay zero and are sliced off.
    """
    w1, b1, w2, b2, w3, b3 = params
    L, H = w1.shape
    I = w3.shape[1]
    Lp, Hp, Ip = _round_up(L, 128), _round_up(H, 128), _round_up(I, 128)

    def pad2(x, rows, cols, dtype):
        if x.shape == (rows, cols) and x.dtype == dtype:
            return x
        buf = jnp.zeros((rows, cols), dtype)
        return buf.at[:x.shape[0], :x.shape[1]].set(x.astype(dtype))

    return PreparedParams(
        w1=pad2(w1, Lp, Hp, jnp.bfloat16),
        b1=pad2(b1, 1, Hp, jnp.float32),
        w2=pad2(w2, Hp, Hp, jnp.bfloat16),
        b2=pad2(b2, 1, Hp, jnp.float32),
        w3=pad2(w3, Hp, Ip, jnp.bfloat16),
        b3=pad2(b3, 1, Ip, jnp.float32),
        L=L, H=H, I=I, Lp=Lp, Hp=Hp, Ip=Ip,
    )


# ---------------------------------------------------------------------------
# Tile selection / VMEM accounting
# ---------------------------------------------------------------------------
def _footprint_bytes(TB, Lp, Hp, Ip, weight_bufs):
    bytes_weights = weight_bufs * ((Lp * Hp + Hp * Hp + Hp * Ip) * 2
                                   + (2 * Hp + Ip) * 4)
    bytes_io = 2 * (TB * Lp * 2 + TB * Ip * 2)       # double-buffered z + bf16 out
    bytes_act = 2 * TB * Hp * 4 + TB * Ip * 4        # h1/h2/h3 live in f32
    return bytes_weights + bytes_io + bytes_act


def _pick_batch_tile(B, Lp, Hp, Ip, capacity):
    large_vmem = capacity >= (96 << 20)               # v5e/v6e (128 MiB) vs v7x (64 MiB)
    if B <= 16:
        TB = _round_up(max(B, 1), 8)
    else:
        # >= 2 (even) grid steps so both v7x TensorCores get work; large tiles
        # on v5e/v6e push the mem-bound kernel toward the HBM roofline.
        max_tile = 1024 if large_vmem else 512
        TB = min(_round_up((B + 1) // 2, 8), max_tile)
    # Shrink until the single-buffered-weights footprint fits in ~85% of VMEM.
    budget = int(capacity * 0.85)
    while TB > 8 and _footprint_bytes(TB, Lp, Hp, Ip, 1) > budget:
        TB = max(8, _round_up(TB // 2, 8))
    return TB


# ---------------------------------------------------------------------------
# pallas_call construction
# ---------------------------------------------------------------------------
def _run_kernel(z_p, p: PreparedParams, TB, B_pad, capacity,
                single_buffer_weights):
    Lp, Hp, Ip = p.Lp, p.Hp, p.Ip
    grid = (B_pad // TB,)

    def const_spec(shape):
        if single_buffer_weights:
            # Constant index_map -> one resident buffer is enough.
            return pl.BlockSpec(shape, lambda i: (0, 0),
                                pipeline_mode=pl.Buffered(1))
        return pl.BlockSpec(shape, lambda i: (0, 0))

    weight_bufs = 1 if single_buffer_weights else 2
    vmem_limit = _footprint_bytes(TB, Lp, Hp, Ip, weight_bufs) + (4 << 20)
    vmem_limit = int(min(max(vmem_limit, 16 << 20), capacity))

    cost = pl.CostEstimate(
        flops=2 * B_pad * (Lp * Hp + Hp * Hp + Hp * Ip),
        transcendentals=B_pad * Ip,
        bytes_accessed=(B_pad * Lp * 2
                        + (Lp * Hp + Hp * Hp + Hp * Ip) * 2
                        + (2 * Hp + Ip) * 4
                        + B_pad * Ip * 2),
    )

    return pl.pallas_call(
        generator_kernel,
        out_shape=jax.ShapeDtypeStruct((B_pad, Ip), jnp.bfloat16),
        grid=grid,
        in_specs=[
            # z tile is tiny; default double-buffering already hides its DMA.
            pl.BlockSpec((TB, Lp), lambda i: (i, 0)),   # z: tiled over batch
            const_spec((Lp, Hp)),                       # w1: resident
            const_spec((1, Hp)),                        # b1: resident
            const_spec((Hp, Hp)),                       # w2: resident
            const_spec((1, Hp)),                        # b2: resident
            const_spec((Hp, Ip)),                       # w3: resident
            const_spec((1, Ip)),                        # b3: resident
        ],
        out_specs=pl.BlockSpec((TB, Ip), lambda i: (i, 0)),
        compiler_params=pltpu.CompilerParams(
            dimension_semantics=("parallel",),
            vmem_limit_bytes=vmem_limit,
        ),
        cost_estimate=cost,
    )(z_p, p.w1, p.b1, p.w2, p.b2, p.w3, p.b3)


# ---------------------------------------------------------------------------
# Public forward
# ---------------------------------------------------------------------------
def generator_forward(z, params, *, batch_tile=None):
    """Run the fused Pallas kernel. z: (B, latent). Returns (B, img_size).

    `params` may be a raw (w1,b1,w2,b2,w3,b3) tuple or a PreparedParams (the
    latter avoids re-padding the weights on every call).
    """
    p = params if isinstance(params, PreparedParams) \
        else prepare_generator_params(params)

    B, L = z.shape
    assert L == p.L, f"latent size mismatch: {L} vs {p.L}"

    capacity = _vmem_capacity_bytes()
    TB = batch_tile if batch_tile is not None \
        else _pick_batch_tile(B, p.Lp, p.Hp, p.Ip, capacity)
    B_pad = _round_up(B, TB)

    # Pad / cast z only when necessary (skip the extra HBM pass if aligned).
    if z.shape == (B_pad, p.Lp):
        z_p = z.astype(jnp.bfloat16)
    else:
        z_p = jnp.zeros((B_pad, p.Lp), jnp.bfloat16)
        z_p = z_p.at[:B, :L].set(z.astype(jnp.bfloat16))

    try:
        out_padded = _run_kernel(z_p, p, TB, B_pad, capacity,
                                 single_buffer_weights=True)
    except Exception:
        # Fallback if single-buffered (Buffered(1)) specs are unsupported.
        out_padded = _run_kernel(z_p, p, TB, B_pad, capacity,
                                 single_buffer_weights=False)

    out = out_padded
    if out.shape != (B, p.I):
        out = out[:B, :p.I]
    if out.dtype != z.dtype:
        out = out.astype(z.dtype)
    return out


# ---------------------------------------------------------------------------
# Init + pure-JAX reference
# ---------------------------------------------------------------------------
def init_generator_params(key, img_size, latent_size, hidden_size,
                          dtype=jnp.float32):
    """PyTorch nn.Linear-style init: U(-1/sqrt(fan_in), 1/sqrt(fan_in)).
    Weights stored pre-transposed as (in_features, out_features)."""
    def linear(k, fan_in, fan_out):
        kw, kb = jax.random.split(k)
        bound = 1.0 / jnp.sqrt(jnp.float32(fan_in))
        w = jax.random.uniform(kw, (fan_in, fan_out), dtype, -bound, bound)
        b = jax.random.uniform(kb, (1, fan_out), dtype, -bound, bound)
        return w, b

    k1, k2, k3 = jax.random.split(key, 3)
    w1, b1 = linear(k1, latent_size, hidden_size)
    w2, b2 = linear(k2, hidden_size, hidden_size)
    w3, b3 = linear(k3, hidden_size, img_size)
    return (w1, b1, w2, b2, w3, b3)


def reference_forward(z, params):
    """Pure-JAX f32 reference (eval-mode Dropout == identity)."""
    w1, b1, w2, b2, w3, b3 = params
    h1 = jnp.maximum(z @ w1 + b1, 0.0)
    h2 = jnp.maximum(h1 @ w2 + b2, 0.0)
    return jnp.tanh(h2 @ w3 + b3)


if __name__ == "__main__":
    # Small shapes consistent with the module's forward contract.
    batch = 8
    latent_size = 16
    hidden_size = 32
    img_size = 64

    key = jax.random.PRNGKey(0)
    k_params, k_z = jax.random.split(key)

    params = init_generator_params(k_params, img_size, latent_size, hidden_size)
    prepared = prepare_generator_params(params)   # pad/cast weights once
    z = jax.random.normal(k_z, (batch, latent_size), jnp.float32)

    out = generator_forward(z, prepared)
    out = jax.block_until_ready(out)

    ref = reference_forward(z, params)
    assert out.shape == (batch, img_size), out.shape
    # bf16 MXU inputs + bf16 (bounded) output with f32 accumulation ->
    # loosened tolerance vs the f32 reference.
    assert jnp.allclose(out, ref, atol=3e-2, rtol=0.0), "mismatch vs reference"

    print("KERNEL_OK")
</pallas_src>

<mosaic_0001>
module attributes {stable_mosaic.version = 11 : i64} {
  func.func @generator_kernel(%arg0: i32, %arg1: memref<8x128xbf16, #tpu.memory_space<vmem>>, %arg2: memref<128x128xbf16, #tpu.memory_space<vmem>>, %arg3: memref<1x128xf32, #tpu.memory_space<vmem>>, %arg4: memref<128x128xbf16, #tpu.memory_space<vmem>>, %arg5: memref<1x128xf32, #tpu.memory_space<vmem>>, %arg6: memref<128x128xbf16, #tpu.memory_space<vmem>>, %arg7: memref<1x128xf32, #tpu.memory_space<vmem>>, %arg8: memref<8x128xbf16, #tpu.memory_space<vmem>>) attributes {dimension_semantics = [#tpu.dimension_semantics<parallel>], iteration_bounds = array<i64: 1>, scalar_prefetch = 0 : i64, scratch_operands = 0 : i64, tpu.core_type = #tpu.core_type<tc>, window_params = [{transform_indices = @transform_0, window_bounds = array<i64: 8, 128>}, {pipeline_mode = #tpu.pipeline_mode<synchronous>, transform_indices = @transform_1, window_bounds = array<i64: 128, 128>}, {pipeline_mode = #tpu.pipeline_mode<synchronous>, transform_indices = @transform_2, window_bounds = array<i64: 1, 128>}, {pipeline_mode = #tpu.pipeline_mode<synchronous>, transform_indices = @transform_3, window_bounds = array<i64: 128, 128>}, {pipeline_mode = #tpu.pipeline_mode<synchronous>, transform_indices = @transform_4, window_bounds = array<i64: 1, 128>}, {pipeline_mode = #tpu.pipeline_mode<synchronous>, transform_indices = @transform_5, window_bounds = array<i64: 128, 128>}, {pipeline_mode = #tpu.pipeline_mode<synchronous>, transform_indices = @transform_6, window_bounds = array<i64: 1, 128>}, {transform_indices = @transform_7, window_bounds = array<i64: 8, 128>}]} {
    %c0 = arith.constant 0 : index
    %c0_0 = arith.constant 0 : index
    %0 = vector.load %arg1[%c0, %c0_0] : memref<8x128xbf16, #tpu.memory_space<vmem>>, vector<8x128xbf16>
    %c0_1 = arith.constant 0 : index
    %c0_2 = arith.constant 0 : index
    %1 = vector.load %arg2[%c0_1, %c0_2] : memref<128x128xbf16, #tpu.memory_space<vmem>>, vector<128x128xbf16>
    %cst = arith.constant dense<0.000000e+00> : vector<8x128xf32>
    %2 = tpu.matmul %0, %1, %cst {dimension_numbers = #tpu.dot_dimension_numbers<[1], [0], [0], [1], [0, 0, 1, 1], [], []>} : vector<8x128xbf16>, vector<128x128xbf16>, vector<8x128xf32> -> vector<8x128xf32>
    %c0_3 = arith.constant 0 : index
    %c0_4 = arith.constant 0 : index
    %3 = vector.load %arg3[%c0_3, %c0_4] : memref<1x128xf32, #tpu.memory_space<vmem>>, vector<1x128xf32>
    %4 = vector.broadcast %3 : vector<1x128xf32> to vector<8x128xf32>
    %5 = arith.addf %2, %4 : vector<8x128xf32>
    %cst_5 = arith.constant 0.000000e+00 : f32
    %6 = vector.broadcast %cst_5 : f32 to vector<8x128xf32>
    %7 = arith.maximumf %5, %6 : vector<8x128xf32>
    %8 = arith.truncf %7 : vector<8x128xf32> to vector<8x128xbf16>
    %c0_6 = arith.constant 0 : index
    %c0_7 = arith.constant 0 : index
    %9 = vector.load %arg4[%c0_6, %c0_7] : memref<128x128xbf16, #tpu.memory_space<vmem>>, vector<128x128xbf16>
    %cst_8 = arith.constant dense<0.000000e+00> : vector<8x128xf32>
    %10 = tpu.matmul %8, %9, %cst_8 {dimension_numbers = #tpu.dot_dimension_numbers<[1], [0], [0], [1], [0, 0, 1, 1], [], []>} : vector<8x128xbf16>, vector<128x128xbf16>, vector<8x128xf32> -> vector<8x128xf32>
    %c0_9 = arith.constant 0 : index
    %c0_10 = arith.constant 0 : index
    %11 = vector.load %arg5[%c0_9, %c0_10] : memref<1x128xf32, #tpu.memory_space<vmem>>, vector<1x128xf32>
    %12 = vector.broadcast %11 : vector<1x128xf32> to vector<8x128xf32>
    %13 = arith.addf %10, %12 : vector<8x128xf32>
    %cst_11 = arith.constant 0.000000e+00 : f32
    %14 = vector.broadcast %cst_11 : f32 to vector<8x128xf32>
    %15 = arith.maximumf %13, %14 : vector<8x128xf32>
    %16 = arith.truncf %15 : vector<8x128xf32> to vector<8x128xbf16>
    %c0_12 = arith.constant 0 : index
    %c0_13 = arith.constant 0 : index
    %17 = vector.load %arg6[%c0_12, %c0_13] : memref<128x128xbf16, #tpu.memory_space<vmem>>, vector<128x128xbf16>
    %cst_14 = arith.constant dense<0.000000e+00> : vector<8x128xf32>
    %18 = tpu.matmul %16, %17, %cst_14 {dimension_numbers = #tpu.dot_dimension_numbers<[1], [0], [0], [1], [0, 0, 1, 1], [], []>} : vector<8x128xbf16>, vector<128x128xbf16>, vector<8x128xf32> -> vector<8x128xf32>
    %c0_15 = arith.constant 0 : index
    %c0_16 = arith.constant 0 : index
    %19 = vector.load %arg7[%c0_15, %c0_16] : memref<1x128xf32, #tpu.memory_space<vmem>>, vector<1x128xf32>
    %20 = vector.broadcast %19 : vector<1x128xf32> to vector<8x128xf32>
    %21 = arith.addf %18, %20 : vector<8x128xf32>
    %22 = math.tanh %21 : vector<8x128xf32>
    %23 = arith.truncf %22 : vector<8x128xf32> to vector<8x128xbf16>
    %c0_17 = arith.constant 0 : index
    %c0_18 = arith.constant 0 : index
    %24 = vector.load %arg8[%c0_17, %c0_18] : memref<8x128xbf16, #tpu.memory_space<vmem>>, vector<8x128xbf16>
    tpu.vector_store %arg8[%c0_17, %c0_18], %23 {strides = array<i32>} : memref<8x128xbf16, #tpu.memory_space<vmem>>, vector<8x128xbf16>,
    return
  }
  func.func @transform_0(%arg0: i32) -> (i32, i32) {
    %c0_i32 = arith.constant 0 : i32
    %c0_i32_0 = arith.constant 0 : i32
    return %arg0, %c0_i32 : i32, i32
  }
  func.func @transform_1(%arg0: i32) -> (i32, i32) {
    %c0_i32 = arith.constant 0 : i32
    %c0_i32_0 = arith.constant 0 : i32
    %c0_i32_1 = arith.constant 0 : i32
    return %c0_i32, %c0_i32_0 : i32, i32
  }
  func.func @transform_2(%arg0: i32) -> (i32, i32) {
    %c0_i32 = arith.constant 0 : i32
    %c0_i32_0 = arith.constant 0 : i32
    %c0_i32_1 = arith.constant 0 : i32
    return %c0_i32, %c0_i32_0 : i32, i32
  }
  func.func @transform_3(%arg0: i32) -> (i32, i32) {
    %c0_i32 = arith.constant 0 : i32
    %c0_i32_0 = arith.constant 0 : i32
    %c0_i32_1 = arith.constant 0 : i32
    return %c0_i32, %c0_i32_0 : i32, i32
  }
  func.func @transform_4(%arg0: i32) -> (i32, i32) {
    %c0_i32 = arith.constant 0 : i32
    %c0_i32_0 = arith.constant 0 : i32
    %c0_i32_1 = arith.constant 0 : i32
    return %c0_i32, %c0_i32_0 : i32, i32
  }
  func.func @transform_5(%arg0: i32) -> (i32, i32) {
    %c0_i32 = arith.constant 0 : i32
    %c0_i32_0 = arith.constant 0 : i32
    %c0_i32_1 = arith.constant 0 : i32
    return %c0_i32, %c0_i32_0 : i32, i32
  }
  func.func @transform_6(%arg0: i32) -> (i32, i32) {
    %c0_i32 = arith.constant 0 : i32
    %c0_i32_0 = arith.constant 0 : i32
    %c0_i32_1 = arith.constant 0 : i32
    return %c0_i32, %c0_i32_0 : i32, i32
  }
  func.func @transform_7(%arg0: i32) -> (i32, i32) {
    %c0_i32 = arith.constant 0 : i32
    %c0_i32_0 = arith.constant 0 : i32
    return %arg0, %c0_i32 : i32, i32
  }
}

module attributes {stable_mosaic.version = 11 : i64} {
  func.func @generator_kernel(%arg0: i32, %arg1: memref<8x128xbf16, #tpu.memory_space<vmem>>, %arg2: memref<128x128xbf16, #tpu.memory_space<vmem>>, %arg3: memref<1x128xf32, #tpu.memory_space<vmem>>, %arg4: memref<128x128xbf16, #tpu.memory_space<vmem>>, %arg5: memref<1x128xf32, #tpu.memory_space<vmem>>, %arg6: memref<128x128xbf16, #tpu.memory_space<vmem>>, %arg7: memref<1x128xf32, #tpu.memory_space<vmem>>, %arg8: memref<8x128xbf16, #tpu.memory_space<vmem>>) attributes {dimension_semantics = [#tpu.dimension_semantics<parallel>], iteration_bounds = array<i64: 1>, scalar_prefetch = 0 : i64, scratch_operands = 0 : i64, tpu.core_type = #tpu.core_type<tc>, window_params = [{transform_indices = @transform_0, window_bounds = array<i64: 8, 128>}, {pipeline_mode = #tpu.pipeline_mode<synchronous>, transform_indices = @transform_1, window_bounds = array<i64: 128, 128>}, {pipeline_mode = #tpu.pipeline_mode<synchronous>, transform_indices = @transform_2, window_bounds = array<i64: 1, 128>}, {pipeline_mode = #tpu.pipeline_mode<synchronous>, transform_indices = @transform_3, window_bounds = array<i64: 128, 128>}, {pipeline_mode = #tpu.pipeline_mode<synchronous>, transform_indices = @transform_4, window_bounds = array<i64: 1, 128>}, {pipeline_mode = #tpu.pipeline_mode<synchronous>, transform_indices = @transform_5, window_bounds = array<i64: 128, 128>}, {pipeline_mode = #tpu.pipeline_mode<synchronous>, transform_indices = @transform_6, window_bounds = array<i64: 1, 128>}, {transform_indices = @transform_7, window_bounds = array<i64: 8, 128>}]} {
    %c0 = arith.constant 0 : index
    %c0_0 = arith.constant 0 : index
    %0 = vector.load %arg1[%c0, %c0_0] : memref<8x128xbf16, #tpu.memory_space<vmem>>, vector<8x128xbf16>
    %c0_1 = arith.constant 0 : index
    %c0_2 = arith.constant 0 : index
    %1 = vector.load %arg2[%c0_1, %c0_2] : memref<128x128xbf16, #tpu.memory_space<vmem>>, vector<128x128xbf16>
    %cst = arith.constant dense<0.000000e+00> : vector<8x128xf32>
    %2 = tpu.matmul %0, %1, %cst {dimension_numbers = #tpu.dot_dimension_numbers<[1], [0], [0], [1], [0, 0, 1, 1], [], []>} : vector<8x128xbf16>, vector<128x128xbf16>, vector<8x128xf32> -> vector<8x128xf32>
    %c0_3 = arith.constant 0 : index
    %c0_4 = arith.constant 0 : index
    %3 = vector.load %arg3[%c0_3, %c0_4] : memref<1x128xf32, #tpu.memory_space<vmem>>, vector<1x128xf32>
    %4 = vector.broadcast %3 : vector<1x128xf32> to vector<8x128xf32>
    %5 = arith.addf %2, %4 : vector<8x128xf32>
    %cst_5 = arith.constant 0.000000e+00 : f32
    %6 = vector.broadcast %cst_5 : f32 to vector<8x128xf32>
    %7 = arith.maximumf %5, %6 : vector<8x128xf32>
    %8 = arith.truncf %7 : vector<8x128xf32> to vector<8x128xbf16>
    %c0_6 = arith.constant 0 : index
    %c0_7 = arith.constant 0 : index
    %9 = vector.load %arg4[%c0_6, %c0_7] : memref<128x128xbf16, #tpu.memory_space<vmem>>, vector<128x128xbf16>
    %cst_8 = arith.constant dense<0.000000e+00> : vector<8x128xf32>
    %10 = tpu.matmul %8, %9, %cst_8 {dimension_numbers = #tpu.dot_dimension_numbers<[1], [0], [0], [1], [0, 0, 1, 1], [], []>} : vector<8x128xbf16>, vector<128x128xbf16>, vector<8x128xf32> -> vector<8x128xf32>
    %c0_9 = arith.constant 0 : index
    %c0_10 = arith.constant 0 : index
    %11 = vector.load %arg5[%c0_9, %c0_10] : memref<1x128xf32, #tpu.memory_space<vmem>>, vector<1x128xf32>
    %12 = vector.broadcast %11 : vector<1x128xf32> to vector<8x128xf32>
    %13 = arith.addf %10, %12 : vector<8x128xf32>
    %cst_11 = arith.constant 0.000000e+00 : f32
    %14 = vector.broadcast %cst_11 : f32 to vector<8x128xf32>
    %15 = arith.maximumf %13, %14 : vector<8x128xf32>
    %16 = arith.truncf %15 : vector<8x128xf32> to vector<8x128xbf16>
    %c0_12 = arith.constant 0 : index
    %c0_13 = arith.constant 0 : index
    %17 = vector.load %arg6[%c0_12, %c0_13] : memref<128x128xbf16, #tpu.memory_space<vmem>>, vector<128x128xbf16>
    %cst_14 = arith.constant dense<0.000000e+00> : vector<8x128xf32>
    %18 = tpu.matmul %16, %17, %cst_14 {dimension_numbers = #tpu.dot_dimension_numbers<[1], [0], [0], [1], [0, 0, 1, 1], [], []>} : vector<8x128xbf16>, vector<128x128xbf16>, vector<8x128xf32> -> vector<8x128xf32>
    %c0_15 = arith.constant 0 : index
    %c0_16 = arith.constant 0 : index
    %19 = vector.load %arg7[%c0_15, %c0_16] : memref<1x128xf32, #tpu.memory_space<vmem>>, vector<1x128xf32>
    %20 = vector.broadcast %19 : vector<1x128xf32> to vector<8x128xf32>
    %21 = arith.addf %18, %20 : vector<8x128xf32>
    %22 = math.tanh %21 : vector<8x128xf32>
    %23 = arith.truncf %22 : vector<8x128xf32> to vector<8x128xbf16>
    %c0_17 = arith.constant 0 : index
    %c0_18 = arith.constant 0 : index
    %24 = vector.load %arg8[%c0_17, %c0_18] : memref<8x128xbf16, #tpu.memory_space<vmem>>, vector<8x128xbf16>
    tpu.vector_store %arg8[%c0_17, %c0_18], %23 {strides = array<i32>} : memref<8x128xbf16, #tpu.memory_space<vmem>>, vector<8x128xbf16>,
    return
  }
  func.func @transform_0(%arg0: i32) -> (i32, i32) {
    %c0_i32 = arith.constant 0 : i32
    %c0_i32_0 = arith.constant 0 : i32
    return %arg0, %c0_i32 : i32, i32
  }
  func.func @transform_1(%arg0: i32) -> (i32, i32) {
    %c0_i32 = arith.constant 0 : i32
    %c0_i32_0 = arith.constant 0 : i32
    %c0_i32_1 = arith.constant 0 : i32
    return %c0_i32, %c0_i32_0 : i32, i32
  }
  func.func @transform_2(%arg0: i32) -> (i32, i32) {
    %c0_i32 = arith.constant 0 : i32
    %c0_i32_0 = arith.constant 0 : i32
    %c0_i32_1 = arith.constant 0 : i32
    return %c0_i32, %c0_i32_0 : i32, i32
  }
  func.func @transform_3(%arg0: i32) -> (i32, i32) {
    %c0_i32 = arith.constant 0 : i32
    %c0_i32_0 = arith.constant 0 : i32
    %c0_i32_1 = arith.constant 0 : i32
    return %c0_i32, %c0_i32_0 : i32, i32
  }
  func.func @transform_4(%arg0: i32) -> (i32, i32) {
    %c0_i32 = arith.constant 0 : i32
    %c0_i32_0 = arith.constant 0 : i32
    %c0_i32_1 = arith.constant 0 : i32
    return %c0_i32, %c0_i32_0 : i32, i32
  }
  func.func @transform_5(%arg0: i32) -> (i32, i32) {
    %c0_i32 = arith.constant 0 : i32
    %c0_i32_0 = arith.constant 0 : i32
    %c0_i32_1 = arith.constant 0 : i32
    return %c0_i32, %c0_i32_0 : i32, i32
  }
  func.func @transform_6(%arg0: i32) -> (i32, i32) {
    %c0_i32 = arith.constant 0 : i32
    %c0_i32_0 = arith.constant 0 : i32
    %c0_i32_1 = arith.constant 0 : i32
    return %c0_i32, %c0_i32_0 : i32, i32
  }
  func.func @transform_7(%arg0: i32) -> (i32, i32) {
    %c0_i32 = arith.constant 0 : i32
    %c0_i32_0 = arith.constant 0 : i32
    return %arg0, %c0_i32 : i32, i32
  }
}

</mosaic_0001>

<bundles_post_ra>
// kernel: tpu_custom_call.1
= control target key start
LH: loop header
LB: loop body
LE: loop exit
PB: predicated region body
PF: predicated region fallthrough
CT: control target
= control target key end

     0   :  { %12 = vsyncpa [#allocation3], 0  ;;  %s863_s0 = inlined_call_operand.hbm [shape: bf16[8,128], index: 0, kind: input, shape index: {}]   ;;  %s864_s1 = inlined_call_operand.hbm [shape: bf16[128,128], index: 1, kind: input, shape index: {}]   ;;  %s865_s2 = inlined_call_operand.vmem [shape: f32[1,128], index: 2, kind: input, shape index: {}]   ;;  %s866_s3 = inlined_call_operand.hbm [shape: bf16[128,128], index: 3, kind: input, shape index: {}]   ;;  %s867_s4 = inlined_call_operand.vmem [shape: f32[1,128], index: 4, kind: input, shape index: {}]   ;;  %s868_s5 = inlined_call_operand.hbm [shape: bf16[128,128], index: 5, kind: input, shape index: {}]   ;;  %s869_s6 = inlined_call_operand.vmem [shape: f32[1,128], index: 6, kind: input, shape index: {}]   ;;  %s870_s7 = inlined_call_operand.hbm [shape: bf16[8,128], index: 7, kind: output, shape index: {}]  }
   0x1   :  { %13 = vsyncpa [#allocation6], 0 }
   0x2   :  { %14 = vsyncpa [#allocation9], 0 }
   0x3   :  { %15 = vsyncpa [#allocation4], 0  ;;  %s706_s24 = smov [#allocation5]   ;;  %s588_s28 = scalar_lea.hbm %s864_s1, 1024 }
   0x4   :  { %s31_s25 = sshll.u32 %s706_s24, 4  ;;  %p589_p0 = scmp.ne.s32.totalorder %s864_s1, %s588_s28  ;;  %s32_s25 = int_to_ptr.vmem [resolvable:$true] %s31_s25 }
   0x5   :  { %p592_p1 = scmp.lt.u32.totalorder %s588_s28, %s864_s1 }
   0x7   :  { %p594_p2 = pnand %p592_p1, %p589_p0 }
   0x9   :  { %597 = shalt.err (!%p594_p2)
}
   0xa   :  { %s598_s10 = scalar_lea.vmem %s32_s25, 1024  ;;  %p603_p4 = scmp.lt.s32.totalorder %s32_s25, %s32_s25 }
   0xb   :  { %p599_p3 = scmp.ne.s32.totalorder %s32_s25, %s598_s10  ;;  %p604_p5 = scmp.lt.s32.totalorder %s598_s10, %s598_s10 }
   0xd   :  { %p605_p6 = por %p604_p5, %p603_p4 }
   0xf   :  { %p606_p7 = pnand %p605_p6, %p599_p3 }
  0x11   :  { %609 = shalt.err (!%p606_p7)
}
  0x12   :  { %s707_s11 = smov 64   ;;  %s708_s12 = smov 4  }
  0x13   :  { %37 = dma.hbm_to_vmem [thread:$0]  %s864_s1, 1024, %s32_s25, [#allocation6], %s707_s11, %s707_s11, %s708_s12  }
  0x14   :  { %s709_s15 = smov [#allocation2]   ;;  %s710_s17 = smov [#allocation7]  }
  0x15   :  { %s22_s16 = sshll.u32 %s709_s15, 4  ;;  %s45_s18 = sshll.u32 %s710_s17, 4  ;;  %s23_s16 = int_to_ptr.vmem [resolvable:$true] %s22_s16  ;;  %s46_s18 = int_to_ptr.vmem [resolvable:$true] %s45_s18 }
  0x16   :  { %s610_s21 = scalar_lea.hbm %s863_s0, 64 }
  0x17   :  { %p611_p8 = scmp.ne.s32.totalorder %s863_s0, %s610_s21  ;;  %p614_p9 = scmp.lt.u32.totalorder %s610_s21, %s863_s0 }
  0x19   :  { %p616_p10 = pnand %p614_p9, %p611_p8 }
  0x1b   :  { %619 = shalt.err (!%p616_p10)
}
  0x1c   :  { %s620_s1 = scalar_lea.vmem %s23_s16, 64  ;;  %p625_p12 = scmp.lt.s32.totalorder %s23_s16, %s23_s16 }
  0x1d   :  { %p621_p11 = scmp.ne.s32.totalorder %s23_s16, %s620_s1  ;;  %p626_p13 = scmp.lt.s32.totalorder %s620_s1, %s620_s1 }
  0x1f   :  { %p627_p0 = por %p626_p13, %p625_p12 }
  0x21   :  { %p628_p1 = pnand %p627_p0, %p621_p11 }
  0x23   :  { %631 = shalt.err (!%p628_p1)
}
  0x24   :  { %25 = dma.hbm_to_vmem [thread:$0]  %s863_s0, 64, %s23_s16, [#allocation3]  }
  0x25   :  { %s632_s30 = scalar_lea.hbm %s866_s3, 1024 }
  0x26   :  { %p633_p2 = scmp.ne.s32.totalorder %s866_s3, %s632_s30  ;;  %p636_p3 = scmp.lt.u32.totalorder %s632_s30, %s866_s3 }
  0x28   :  { %p638_p4 = pnand %p636_p3, %p633_p2 }
  0x2a   :  { %641 = shalt.err (!%p638_p4)
}
  0x2b   :  { %s642_s14 = scalar_lea.vmem %s46_s18, 1024  ;;  %p647_p6 = scmp.lt.s32.totalorder %s46_s18, %s46_s18 }
  0x2c   :  { %p643_p5 = scmp.ne.s32.totalorder %s46_s18, %s642_s14  ;;  %p648_p7 = scmp.lt.s32.totalorder %s642_s14, %s642_s14 }
  0x2e   :  { %p649_p8 = por %p648_p7, %p647_p6 }
  0x30   :  { %p650_p9 = pnand %p649_p8, %p643_p5 }
  0x32   :  { %653 = shalt.err (!%p650_p9)
}
  0x33   :  { %51 = dma.hbm_to_vmem [thread:$0]  %s866_s3, 1024, %s46_s18, [#allocation6], %s707_s11, %s707_s11, %s708_s12  }
  0x34   :  { %s711_s16 = smov [#allocation8]   ;;  %s654_s21 = scalar_lea.hbm %s868_s5, 1024 }
  0x35   :  { %s59_s17 = sshll.u32 %s711_s16, 4  ;;  %p655_p10 = scmp.ne.s32.totalorder %s868_s5, %s654_s21  ;;  %s60_s17 = int_to_ptr.vmem [resolvable:$true] %s59_s17 }
  0x36   :  { %p658_p11 = scmp.lt.u32.totalorder %s654_s21, %s868_s5 }
  0x38   :  { %p660_p12 = pnand %p658_p11, %p655_p10 }
  0x3a   :  { %663 = shalt.err (!%p660_p12)
}
  0x3b   :  { %s664_s1 = scalar_lea.vmem %s60_s17, 1024  ;;  %p669_p0 = scmp.lt.s32.totalorder %s60_s17, %s60_s17 }
  0x3c   :  { %p665_p13 = scmp.ne.s32.totalorder %s60_s17, %s664_s1  ;;  %p670_p1 = scmp.lt.s32.totalorder %s664_s1, %s664_s1 }
  0x3e   :  { %p671_p2 = por %p670_p1, %p669_p0 }
  0x40   :  { %p672_p3 = pnand %p671_p2, %p665_p13 }
  0x42   :  { %675 = shalt.err (!%p672_p3)
}
  0x43   :  { %65 = dma.hbm_to_vmem [thread:$0]  %s868_s5, 1024, %s60_s17, [#allocation9], %s707_s11, %s707_s11, %s708_s12  }
  0x44   :  { %698 = dma.done.wait [#allocation3], 64  }
  0x45   :  { %699 = vsyncadd [#allocation3], 4294967232 }
  0x46   :  { %700 = dma.done.wait [#allocation6], 2048  }
  0x47   :  { %701 = vsyncadd [#allocation6], 4294965248 }
  0x48   :  { %702 = dma.done.wait [#allocation9], 1024  }
  0x49   :  { %703 = vsyncadd [#allocation9], 4294966272  ;;  %v712_v0 = vmov 0.0   ;;  %vm713_vm0 = vmmov 0   ;;  %v562_v1 = vld [vmem:[#allocation5] sm:$0xff]   ;;  %v563_v2 = vld [vmem:[#allocation5 + $0x8] sm:$0xff]  }
  0x4a   :  { %493 = vmatprep.subr.bf16.mxu0 %v712_v0  ;;  %509 = vmatprep.mubr.msk.bf16.mxu0 %vm713_vm0, %v712_v0  ;;  %v564_v3 = vld [vmem:[#allocation5 + $0x10] sm:$0xff]   ;;  %v570_v4 = vld [vmem:[#allocation7] sm:$0xff]   ;;  %v565_v5 = vld [vmem:[#allocation5 + $0x18] sm:$0xff]   ;;  %s714_s28 = smov [#allocation10]  }
  0x4b   :  { %513 = vmatprep.subr.bf16.mxu1 %v712_v0  ;;  %529 = vmatprep.mubr.msk.bf16.mxu1 %vm713_vm0, %v712_v0  ;;  %v571_v6 = vld [vmem:[#allocation7 + $0x8] sm:$0xff]   ;;  %v566_v7 = vld [vmem:[#allocation5 + $0x20] sm:$0xff]   ;;  %v572_v8 = vld [vmem:[#allocation7 + $0x10] sm:$0xff]  }
  0x4c   :  { %494 = vmatpush3.bf16.msra.mxu0 %v562_v1  ;;  %514 = vmatpush3.bf16.msra.mxu1 %v570_v4  ;;  %v567_v9 = vld [vmem:[#allocation5 + $0x28] sm:$0xff]   ;;  %v573_v10 = vld [vmem:[#allocation7 + $0x18] sm:$0xff]   ;;  %v568_v11 = vld [vmem:[#allocation5 + $0x30] sm:$0xff]  }
  0x4d   :  { %495 = vmatprep.subr.bf16.mxu0 %v712_v0  ;;  %515 = vmatprep.subr.bf16.mxu1 %v712_v0  ;;  %v574_v12 = vld [vmem:[#allocation7 + $0x20] sm:$0xff]   ;;  %v569_v13 = vld [vmem:[#allocation5 + $0x38] sm:$0xff]   ;;  %v575_v14 = vld [vmem:[#allocation7 + $0x28] sm:$0xff]  }
  0x4e   :  { %v81_v15 = vld [vmem:[#allocation2] sm:$0xf]  ;;  %v576_v16 = vld [vmem:[#allocation7 + $0x30] sm:$0xff]   ;;  %v578_v18 = vld [vmem:[#allocation8] sm:$0xff]  }
  0x4f   :  { %v577_v17 = vld [vmem:[#allocation7 + $0x38] sm:$0xff]   ;;  %v579_v19 = vld [vmem:[#allocation8 + $0x8] sm:$0xff]   ;;  %v580_v20 = vld [vmem:[#allocation8 + $0x10] sm:$0xff]  }
  0x50   :  { %496 = vmatpush3.bf16.msra.mxu0 %v563_v2  ;;  %516 = vmatpush3.bf16.msra.mxu1 %v571_v6  ;;  %v581_v21 = vld [vmem:[#allocation8 + $0x18] sm:$0xff]   ;;  %v582_v22 = vld [vmem:[#allocation8 + $0x20] sm:$0xff]   ;;  %v583_v23 = vld [vmem:[#allocation8 + $0x28] sm:$0xff]  }
  0x51   :  { %497 = vmatprep.subr.bf16.mxu0 %v712_v0  ;;  %517 = vmatprep.subr.bf16.mxu1 %v712_v0  ;;  %v439_v24 = vld [vmem:[%s865_s2] ss:$0 sm:$0xff]  ;;  %v584_v32 = vld [vmem:[#allocation8 + $0x30] sm:$0xff]  }
  0x52   :  { %v585_v33 = vld [vmem:[#allocation8 + $0x38] sm:$0xff]  }
  0x53   :  { %v448_v34 = vld [vmem:[%s867_s4] ss:$0 sm:$0xff]  ;;  %s428_s4 = sshll.u32 %s714_s28, 4  ;;  %s429_s4 = int_to_ptr.vmem [resolvable:$true] %s428_s4 }
  0x54   :  { %498 = vmatpush3.bf16.msra.mxu0 %v564_v3  ;;  %518 = vmatpush3.bf16.msra.mxu1 %v572_v8  ;;  %v457_v42 = vld [vmem:[%s869_s6] ss:$0 sm:$0xff]  ;;  %s676_s29 = scalar_lea.vmem %s429_s4, 64  ;;  %p681_p5 = scmp.lt.s32.totalorder %s429_s4, %s429_s4 }
  0x55   :  { %499 = vmatprep.subr.bf16.mxu0 %v712_v0  ;;  %519 = vmatprep.subr.bf16.mxu1 %v712_v0  ;;  %p677_p4 = scmp.ne.s32.totalorder %s429_s4, %s676_s29  ;;  %p682_p6 = scmp.lt.s32.totalorder %s676_s29, %s676_s29 }
  0x57   :  { %p683_p7 = por %p682_p6, %p681_p5 }
  0x58   :  { %500 = vmatpush3.bf16.msra.mxu0 %v565_v5  ;;  %520 = vmatpush3.bf16.msra.mxu1 %v573_v10 }
  0x59   :  { %501 = vmatprep.subr.bf16.mxu0 %v712_v0  ;;  %521 = vmatprep.subr.bf16.mxu1 %v712_v0  ;;  %p684_p8 = pnand %p683_p7, %p677_p4 }
  0x5c   :  { %502 = vmatpush3.bf16.msra.mxu0 %v566_v7  ;;  %522 = vmatpush3.bf16.msra.mxu1 %v574_v12 }
  0x5d   :  { %503 = vmatprep.subr.bf16.mxu0 %v712_v0  ;;  %523 = vmatprep.subr.bf16.mxu1 %v712_v0 }
  0x60   :  { %504 = vmatpush3.bf16.msra.mxu0 %v567_v9  ;;  %524 = vmatpush3.bf16.msra.mxu1 %v575_v14 }
  0x61   :  { %505 = vmatprep.subr.bf16.mxu0 %v712_v0  ;;  %525 = vmatprep.subr.bf16.mxu1 %v712_v0 }
  0x64   :  { %506 = vmatpush3.bf16.msra.mxu0 %v568_v11  ;;  %526 = vmatpush3.bf16.msra.mxu1 %v576_v16 }
  0x65   :  { %507 = vmatprep.subr.bf16.mxu0 %v712_v0  ;;  %527 = vmatprep.subr.bf16.mxu1 %v712_v0 }
  0x68   :  { %508 = vmatpush3.bf16.msra.mxu0 %v569_v13  ;;  %528 = vmatpush3.bf16.msra.mxu1 %v577_v17 }
  0x69   :  { %533 = vmatprep.subr.bf16.mxu0 %v712_v0 }
  0x6b   :  { %510 = vmatmul.mubr.bf16.vlgmr.msra.gmra.mrb[0].mxu0 %v81_v15 }
  0x6c   :  { %549 = vmatprep.mubr.msk.bf16.mxu0 %vm713_vm0, %v712_v0  ;;  %534 = vmatpush3.bf16.msra.mxu0 %v578_v18 }
  0x6d   :  { %535 = vmatprep.subr.bf16.mxu0 %v712_v0 }
  0x70   :  { %536 = vmatpush3.bf16.msra.mxu0 %v579_v19 }
  0x71   :  { %537 = vmatprep.subr.bf16.mxu0 %v712_v0 }
  0x74   :  { %538 = vmatpush3.bf16.msra.mxu0 %v580_v20 }
  0x75   :  { %539 = vmatprep.subr.bf16.mxu0 %v712_v0 }
  0x78   :  { %540 = vmatpush3.bf16.msra.mxu0 %v581_v21 }
  0x79   :  { %541 = vmatprep.subr.bf16.mxu0 %v712_v0 }
  0x7c   :  { %542 = vmatpush3.bf16.msra.mxu0 %v582_v22 }
  0x7d   :  { %543 = vmatprep.subr.bf16.mxu0 %v712_v0 }
  0x80   :  { %544 = vmatpush3.bf16.msra.mxu0 %v583_v23 }
  0x81   :  { %545 = vmatprep.subr.bf16.mxu0 %v712_v0 }
  0x84   :  { %546 = vmatpush3.bf16.msra.mxu0 %v584_v32 }
  0x85   :  { %547 = vmatprep.subr.bf16.mxu0 %v712_v0 }
  0x88   :  { %548 = vmatpush3.bf16.msra.mxu0 %v585_v33 }
 0x13e   :  { %v187_v25 = vpop.f32.mrb[0].mxu0 }
 0x13f   :  { %v188_v26 = vadd.f32 %v439_v24, %v187_v25  ;;  %v511_v27 = vpop.f32.mrb[1].mxu0 }
 0x140   :  { %v190_v28 = vpop.f32.mrb[2].mxu0 }
 0x141   :  { %v193_v29 = vmax.f32 %v188_v26, 0.0  ;;  %v512_v30 = vpop.f32.mrb[3].mxu0 }
 0x143   :  { %v194_v31 = vpack.c.bf16 %v193_v29, %v193_v29 }
 0x145   :  { %530 = vmatmul.mubr.bf16.vlgmr.msra.gmra.mrb[0].mxu1 %v194_v31 }
 0x218   :  { %v300_v35 = vpop.f32.mrb[0].mxu1 }
 0x219   :  { %v301_v36 = vadd.f32 %v448_v34, %v300_v35  ;;  %v531_v37 = vpop.f32.mrb[1].mxu1 }
 0x21a   :  { %v303_v38 = vpop.f32.mrb[2].mxu1 }
 0x21b   :  { %v306_v39 = vmax.f32 %v301_v36, 0.0  ;;  %v532_v40 = vpop.f32.mrb[3].mxu1 }
 0x21d   :  { %v307_v41 = vpack.c.bf16 %v306_v39, %v306_v39 }
 0x21f   :  { %550 = vmatmul.mubr.bf16.vlgmr.msra.gmra.mrb[4].mxu0 %v307_v41 }
 0x2f2   :  { %v413_v43 = vpop.f32.mrb[4].mxu0 }
 0x2f3   :  { %v414_v44 = vadd.f32 %v457_v42, %v413_v43  ;;  %v551_v45 = vpop.f32.mrb[5].mxu0 }
 0x2f4   :  { %v416_v46 = vpop.f32.mrb[6].mxu0 }
 0x2f5   :  { %586 = vtanh.f32 %v414_v44  ;;  %v552_v47 = vpop.f32.mrb[7].mxu0 }
 0x2ff   :  { %v587_v48 = vpop.eup %586 }
 0x300   :  { %v420_v49 = vpack.c.bf16 %v587_v48, %v587_v48 }
 0x302   :  { %421 = vst [vmem:[#allocation10] sm:$0xf] %v420_v49 }
 0x303   :  { %687 = shalt.err (!%p684_p8)
}
 0x304   :  { %s688_s8 = scalar_lea.hbm %s870_s7, 64 }
 0x305   :  { %p689_p9 = scmp.ne.s32.totalorder %s870_s7, %s688_s8  ;;  %p692_p10 = scmp.lt.u32.totalorder %s688_s8, %s870_s7 }
 0x307   :  { %p694_p11 = pnand %p692_p10, %p689_p9 }
 0x309   :  { %697 = shalt.err (!%p694_p11)
}
 0x30a   :  { %431 = dma.vmem_to_hbm [thread:$0]  %s429_s4, 64, %s870_s7, [#allocation4]  }
 0x30b   :  { %704 = dma.done.wait [#allocation4], 64  }
 0x30c   :  { %705 = vsyncadd [#allocation4], 4294967232 }
 0x30d   :  { %435 = vsyncpa [#allocation3], 1 }
 0x30e   :  { %436 = vsyncpa [#allocation6], 1 }
 0x30f   :  { %437 = vsyncpa [#allocation9], 1 }
 0x310   :  { %438 = vsyncpa [#allocation4], 1 }

// kernel: tpu_custom_call.1
= control target key start
LH: loop header
LB: loop body
LE: loop exit
PB: predicated region body
PF: predicated region fallthrough
CT: control target
= control target key end

     0   :  { %12 = vsyncpa [#allocation3], 0  ;;  %s863_s0 = inlined_call_operand.hbm [shape: bf16[8,128], index: 0, kind: input, shape index: {}]   ;;  %s864_s1 = inlined_call_operand.hbm [shape: bf16[128,128], index: 1, kind: input, shape index: {}]   ;;  %s865_s2 = inlined_call_operand.vmem [shape: f32[1,128], index: 2, kind: input, shape index: {}]   ;;  %s866_s3 = inlined_call_operand.hbm [shape: bf16[128,128], index: 3, kind: input, shape index: {}]   ;;  %s867_s4 = inlined_call_operand.vmem [shape: f32[1,128], index: 4, kind: input, shape index: {}]   ;;  %s868_s5 = inlined_call_operand.hbm [shape: bf16[128,128], index: 5, kind: input, shape index: {}]   ;;  %s869_s6 = inlined_call_operand.vmem [shape: f32[1,128], index: 6, kind: input, shape index: {}]   ;;  %s870_s7 = inlined_call_operand.hbm [shape: bf16[8,128], index: 7, kind: output, shape index: {}]  }
   0x1   :  { %13 = vsyncpa [#allocation6], 0 }
   0x2   :  { %14 = vsyncpa [#allocation9], 0 }
   0x3   :  { %15 = vsyncpa [#allocation4], 0  ;;  %s706_s24 = smov [#allocation5]   ;;  %s588_s28 = scalar_lea.hbm %s864_s1, 1024 }
   0x4   :  { %s31_s25 = sshll.u32 %s706_s24, 4  ;;  %p589_p0 = scmp.ne.s32.totalorder %s864_s1, %s588_s28  ;;  %s32_s25 = int_to_ptr.vmem [resolvable:$true] %s31_s25 }
   0x5   :  { %p592_p1 = scmp.lt.u32.totalorder %s588_s28, %s864_s1 }
   0x7   :  { %p594_p2 = pnand %p592_p1, %p589_p0 }
   0x9   :  { %597 = shalt.err (!%p594_p2)
}
   0xa   :  { %s598_s10 = scalar_lea.vmem %s32_s25, 1024  ;;  %p603_p4 = scmp.lt.s32.totalorder %s32_s25, %s32_s25 }
   0xb   :  { %p599_p3 = scmp.ne.s32.totalorder %s32_s25, %s598_s10  ;;  %p604_p5 = scmp.lt.s32.totalorder %s598_s10, %s598_s10 }
   0xd   :  { %p605_p6 = por %p604_p5, %p603_p4 }
   0xf   :  { %p606_p7 = pnand %p605_p6, %p599_p3 }
  0x11   :  { %609 = shalt.err (!%p606_p7)
}
  0x12   :  { %s707_s11 = smov 64   ;;  %s708_s12 = smov 4  }
  0x13   :  { %37 = dma.hbm_to_vmem [thread:$0]  %s864_s1, 1024, %s32_s25, [#allocation6], %s707_s11, %s707_s11, %s708_s12  }
  0x14   :  { %s709_s15 = smov [#allocation2]   ;;  %s710_s17 = smov [#allocation7]  }
  0x15   :  { %s22_s16 = sshll.u32 %s709_s15, 4  ;;  %s45_s18 = sshll.u32 %s710_s17, 4  ;;  %s23_s16 = int_to_ptr.vmem [resolvable:$true] %s22_s16  ;;  %s46_s18 = int_to_ptr.vmem [resolvable:$true] %s45_s18 }
  0x16   :  { %s610_s21 = scalar_lea.hbm %s863_s0, 64 }
  0x17   :  { %p611_p8 = scmp.ne.s32.totalorder %s863_s0, %s610_s21  ;;  %p614_p9 = scmp.lt.u32.totalorder %s610_s21, %s863_s0 }
  0x19   :  { %p616_p10 = pnand %p614_p9, %p611_p8 }
  0x1b   :  { %619 = shalt.err (!%p616_p10)
}
  0x1c   :  { %s620_s1 = scalar_lea.vmem %s23_s16, 64  ;;  %p625_p12 = scmp.lt.s32.totalorder %s23_s16, %s23_s16 }
  0x1d   :  { %p621_p11 = scmp.ne.s32.totalorder %s23_s16, %s620_s1  ;;  %p626_p13 = scmp.lt.s32.totalorder %s620_s1, %s620_s1 }
  0x1f   :  { %p627_p0 = por %p626_p13, %p625_p12 }
  0x21   :  { %p628_p1 = pnand %p627_p0, %p621_p11 }
  0x23   :  { %631 = shalt.err (!%p628_p1)
}
  0x24   :  { %25 = dma.hbm_to_vmem [thread:$0]  %s863_s0, 64, %s23_s16, [#allocation3]  }
  0x25   :  { %s632_s30 = scalar_lea.hbm %s866_s3, 1024 }
  0x26   :  { %p633_p2 = scmp.ne.s32.totalorder %s866_s3, %s632_s30  ;;  %p636_p3 = scmp.lt.u32.totalorder %s632_s30, %s866_s3 }
  0x28   :  { %p638_p4 = pnand %p636_p3, %p633_p2 }
  0x2a   :  { %641 = shalt.err (!%p638_p4)
}
  0x2b   :  { %s642_s14 = scalar_lea.vmem %s46_s18, 1024  ;;  %p647_p6 = scmp.lt.s32.totalorder %s46_s18, %s46_s18 }
  0x2c   :  { %p643_p5 = scmp.ne.s32.totalorder %s46_s18, %s642_s14  ;;  %p648_p7 = scmp.lt.s32.totalorder %s642_s14, %s642_s14 }
  0x2e   :  { %p649_p8 = por %p648_p7, %p647_p6 }
  0x30   :  { %p650_p9 = pnand %p649_p8, %p643_p5 }
  0x32   :  { %653 = shalt.err (!%p650_p9)
}
  0x33   :  { %51 = dma.hbm_to_vmem [thread:$0]  %s866_s3, 1024, %s46_s18, [#allocation6], %s707_s11, %s707_s11, %s708_s12  }
  0x34   :  { %s711_s16 = smov [#allocation8]   ;;  %s654_s21 = scalar_lea.hbm %s868_s5, 1024 }
  0x35   :  { %s59_s17 = sshll.u32 %s711_s16, 4  ;;  %p655_p10 = scmp.ne.s32.totalorder %s868_s5, %s654_s21  ;;  %s60_s17 = int_to_ptr.vmem [resolvable:$true] %s59_s17 }
  0x36   :  { %p658_p11 = scmp.lt.u32.totalorder %s654_s21, %s868_s5 }
  0x38   :  { %p660_p12 = pnand %p658_p11, %p655_p10 }
  0x3a   :  { %663 = shalt.err (!%p660_p12)
}
  0x3b   :  { %s664_s1 = scalar_lea.vmem %s60_s17, 1024  ;;  %p669_p0 = scmp.lt.s32.totalorder %s60_s17, %s60_s17 }
  0x3c   :  { %p665_p13 = scmp.ne.s32.totalorder %s60_s17, %s664_s1  ;;  %p670_p1 = scmp.lt.s32.totalorder %s664_s1, %s664_s1 }
  0x3e   :  { %p671_p2 = por %p670_p1, %p669_p0 }
  0x40   :  { %p672_p3 = pnand %p671_p2, %p665_p13 }
  0x42   :  { %675 = shalt.err (!%p672_p3)
}
  0x43   :  { %65 = dma.hbm_to_vmem [thread:$0]  %s868_s5, 1024, %s60_s17, [#allocation9], %s707_s11, %s707_s11, %s708_s12  }
  0x44   :  { %698 = dma.done.wait [#allocation3], 64  }
  0x45   :  { %699 = vsyncadd [#allocation3], 4294967232 }
  0x46   :  { %700 = dma.done.wait [#allocation6], 2048  }
  0x47   :  { %701 = vsyncadd [#allocation6], 4294965248 }
  0x48   :  { %702 = dma.done.wait [#allocation9], 1024  }
  0x49   :  { %703 = vsyncadd [#allocation9], 4294966272  ;;  %v712_v0 = vmov 0.0   ;;  %vm713_vm0 = vmmov 0   ;;  %v562_v1 = vld [vmem:[#allocation5] sm:$0xff]   ;;  %v563_v2 = vld [vmem:[#allocation5 + $0x8] sm:$0xff]  }
  0x4a   :  { %493 = vmatprep.subr.bf16.mxu0 %v712_v0  ;;  %509 = vmatprep.mubr.msk.bf16.mxu0 %vm713_vm0, %v712_v0  ;;  %v564_v3 = vld [vmem:[#allocation5 + $0x10] sm:$0xff]   ;;  %v570_v4 = vld [vmem:[#allocation7] sm:$0xff]   ;;  %v565_v5 = vld [vmem:[#allocation5 + $0x18] sm:$0xff]   ;;  %s714_s28 = smov [#allocation10]  }
  0x4b   :  { %513 = vmatprep.subr.bf16.mxu1 %v712_v0  ;;  %529 = vmatprep.mubr.msk.bf16.mxu1 %vm713_vm0, %v712_v0  ;;  %v571_v6 = vld [vmem:[#allocation7 + $0x8] sm:$0xff]   ;;  %v566_v7 = vld [vmem:[#allocation5 + $0x20] sm:$0xff]   ;;  %v572_v8 = vld [vmem:[#allocation7 + $0x10] sm:$0xff]  }
  0x4c   :  { %494 = vmatpush3.bf16.msra.mxu0 %v562_v1  ;;  %514 = vmatpush3.bf16.msra.mxu1 %v570_v4  ;;  %v567_v9 = vld [vmem:[#allocation5 + $0x28] sm:$0xff]   ;;  %v573_v10 = vld [vmem:[#allocation7 + $0x18] sm:$0xff]   ;;  %v568_v11 = vld [vmem:[#allocation5 + $0x30] sm:$0xff]  }
  0x4d   :  { %495 = vmatprep.subr.bf16.mxu0 %v712_v0  ;;  %515 = vmatprep.subr.bf16.mxu1 %v712_v0  ;;  %v574_v12 = vld [vmem:[#allocation7 + $0x20] sm:$0xff]   ;;  %v569_v13 = vld [vmem:[#allocation5 + $0x38] sm:$0xff]   ;;  %v575_v14 = vld [vmem:[#allocation7 + $0x28] sm:$0xff]  }
  0x4e   :  { %v81_v15 = vld [vmem:[#allocation2] sm:$0xf]  ;;  %v576_v16 = vld [vmem:[#allocation7 + $0x30] sm:$0xff]   ;;  %v578_v18 = vld [vmem:[#allocation8] sm:$0xff]  }
  0x4f   :  { %v577_v17 = vld [vmem:[#allocation7 + $0x38] sm:$0xff]   ;;  %v579_v19 = vld [vmem:[#allocation8 + $0x8] sm:$0xff]   ;;  %v580_v20 = vld [vmem:[#allocation8 + $0x10] sm:$0xff]  }
  0x50   :  { %496 = vmatpush3.bf16.msra.mxu0 %v563_v2  ;;  %516 = vmatpush3.bf16.msra.mxu1 %v571_v6  ;;  %v581_v21 = vld [vmem:[#allocation8 + $0x18] sm:$0xff]   ;;  %v582_v22 = vld [vmem:[#allocation8 + $0x20] sm:$0xff]   ;;  %v583_v23 = vld [vmem:[#allocation8 + $0x28] sm:$0xff]  }
  0x51   :  { %497 = vmatprep.subr.bf16.mxu0 %v712_v0  ;;  %517 = vmatprep.subr.bf16.mxu1 %v712_v0  ;;  %v439_v24 = vld [vmem:[%s865_s2] ss:$0 sm:$0xff]  ;;  %v584_v32 = vld [vmem:[#allocation8 + $0x30] sm:$0xff]  }
  0x52   :  { %v585_v33 = vld [vmem:[#allocation8 + $0x38] sm:$0xff]  }
  0x53   :  { %v448_v34 = vld [vmem:[%s867_s4] ss:$0 sm:$0xff]  ;;  %s428_s4 = sshll.u32 %s714_s28, 4  ;;  %s429_s4 = int_to_ptr.vmem [resolvable:$true] %s428_s4 }
  0x54   :  { %498 = vmatpush3.bf16.msra.mxu0 %v564_v3  ;;  %518 = vmatpush3.bf16.msra.mxu1 %v572_v8  ;;  %v457_v42 = vld [vmem:[%s869_s6] ss:$0 sm:$0xff]  ;;  %s676_s29 = scalar_lea.vmem %s429_s4, 64  ;;  %p681_p5 = scmp.lt.s32.totalorder %s429_s4, %s429_s4 }
  0x55   :  { %499 = vmatprep.subr.bf16.mxu0 %v712_v0  ;;  %519 = vmatprep.subr.bf16.mxu1 %v712_v0  ;;  %p677_p4 = scmp.ne.s32.totalorder %s429_s4, %s676_s29  ;;  %p682_p6 = scmp.lt.s32.totalorder %s676_s29, %s676_s29 }
  0x57   :  { %p683_p7 = por %p682_p6, %p681_p5 }
  0x58   :  { %500 = vmatpush3.bf16.msra.mxu0 %v565_v5  ;;  %520 = vmatpush3.bf16.msra.mxu1 %v573_v10 }
  0x59   :  { %501 = vmatprep.subr.bf16.mxu0 %v712_v0  ;;  %521 = vmatprep.subr.bf16.mxu1 %v712_v0  ;;  %p684_p8 = pnand %p683_p7, %p677_p4 }
  0x5c   :  { %502 = vmatpush3.bf16.msra.mxu0 %v566_v7  ;;  %522 = vmatpush3.bf16.msra.mxu1 %v574_v12 }
  0x5d   :  { %503 = vmatprep.subr.bf16.mxu0 %v712_v0  ;;  %523 = vmatprep.subr.bf16.mxu1 %v712_v0 }
  0x60   :  { %504 = vmatpush3.bf16.msra.mxu0 %v567_v9  ;;  %524 = vmatpush3.bf16.msra.mxu1 %v575_v14 }
  0x61   :  { %505 = vmatprep.subr.bf16.mxu0 %v712_v0  ;;  %525 = vmatprep.subr.bf16.mxu1 %v712_v0 }
  0x64   :  { %506 = vmatpush3.bf16.msra.mxu0 %v568_v11  ;;  %526 = vmatpush3.bf16.msra.mxu1 %v576_v16 }
  0x65   :  { %507 = vmatprep.subr.bf16.mxu0 %v712_v0  ;;  %527 = vmatprep.subr.bf16.mxu1 %v712_v0 }
  0x68   :  { %508 = vmatpush3.bf16.msra.mxu0 %v569_v13  ;;  %528 = vmatpush3.bf16.msra.mxu1 %v577_v17 }
  0x69   :  { %533 = vmatprep.subr.bf16.mxu0 %v712_v0 }
  0x6b   :  { %510 = vmatmul.mubr.bf16.vlgmr.msra.gmra.mrb[0].mxu0 %v81_v15 }
  0x6c   :  { %549 = vmatprep.mubr.msk.bf16.mxu0 %vm713_vm0, %v712_v0  ;;  %534 = vmatpush3.bf16.msra.mxu0 %v578_v18 }
  0x6d   :  { %535 = vmatprep.subr.bf16.mxu0 %v712_v0 }
  0x70   :  { %536 = vmatpush3.bf16.msra.mxu0 %v579_v19 }
  0x71   :  { %537 = vmatprep.subr.bf16.mxu0 %v712_v0 }
  0x74   :  { %538 = vmatpush3.bf16.msra.mxu0 %v580_v20 }
  0x75   :  { %539 = vmatprep.subr.bf16.mxu0 %v712_v0 }
  0x78   :  { %540 = vmatpush3.bf16.msra.mxu0 %v581_v21 }
  0x79   :  { %541 = vmatprep.subr.bf16.mxu0 %v712_v0 }
  0x7c   :  { %542 = vmatpush3.bf16.msra.mxu0 %v582_v22 }
  0x7d   :  { %543 = vmatprep.subr.bf16.mxu0 %v712_v0 }
  0x80   :  { %544 = vmatpush3.bf16.msra.mxu0 %v583_v23 }
  0x81   :  { %545 = vmatprep.subr.bf16.mxu0 %v712_v0 }
  0x84   :  { %546 = vmatpush3.bf16.msra.mxu0 %v584_v32 }
  0x85   :  { %547 = vmatprep.subr.bf16.mxu0 %v712_v0 }
  0x88   :  { %548 = vmatpush3.bf16.msra.mxu0 %v585_v33 }
 0x13e   :  { %v187_v25 = vpop.f32.mrb[0].mxu0 }
 0x13f   :  { %v188_v26 = vadd.f32 %v439_v24, %v187_v25  ;;  %v511_v27 = vpop.f32.mrb[1].mxu0 }
 0x140   :  { %v190_v28 = vpop.f32.mrb[2].mxu0 }
 0x141   :  { %v193_v29 = vmax.f32 %v188_v26, 0.0  ;;  %v512_v30 = vpop.f32.mrb[3].mxu0 }
 0x143   :  { %v194_v31 = vpack.c.bf16 %v193_v29, %v193_v29 }
 0x145   :  { %530 = vmatmul.mubr.bf16.vlgmr.msra.gmra.mrb[0].mxu1 %v194_v31 }
 0x218   :  { %v300_v35 = vpop.f32.mrb[0].mxu1 }
 0x219   :  { %v301_v36 = vadd.f32 %v448_v34, %v300_v35  ;;  %v531_v37 = vpop.f32.mrb[1].mxu1 }
 0x21a   :  { %v303_v38 = vpop.f32.mrb[2].mxu1 }
 0x21b   :  { %v306_v39 = vmax.f32 %v301_v36, 0.0  ;;  %v532_v40 = vpop.f32.mrb[3].mxu1 }
 0x21d   :  { %v307_v41 = vpack.c.bf16 %v306_v39, %v306_v39 }
 0x21f   :  { %550 = vmatmul.mubr.bf16.vlgmr.msra.gmra.mrb[4].mxu0 %v307_v41 }
 0x2f2   :  { %v413_v43 = vpop.f32.mrb[4].mxu0 }
 0x2f3   :  { %v414_v44 = vadd.f32 %v457_v42, %v413_v43  ;;  %v551_v45 = vpop.f32.mrb[5].mxu0 }
 0x2f4   :  { %v416_v46 = vpop.f32.mrb[6].mxu0 }
 0x2f5   :  { %586 = vtanh.f32 %v414_v44  ;;  %v552_v47 = vpop.f32.mrb[7].mxu0 }
 0x2ff   :  { %v587_v48 = vpop.eup %586 }
 0x300   :  { %v420_v49 = vpack.c.bf16 %v587_v48, %v587_v48 }
 0x302   :  { %421 = vst [vmem:[#allocation10] sm:$0xf] %v420_v49 }
 0x303   :  { %687 = shalt.err (!%p684_p8)
}
 0x304   :  { %s688_s8 = scalar_lea.hbm %s870_s7, 64 }
 0x305   :  { %p689_p9 = scmp.ne.s32.totalorder %s870_s7, %s688_s8  ;;  %p692_p10 = scmp.lt.u32.totalorder %s688_s8, %s870_s7 }
 0x307   :  { %p694_p11 = pnand %p692_p10, %p689_p9 }
 0x309   :  { %697 = shalt.err (!%p694_p11)
}
 0x30a   :  { %431 = dma.vmem_to_hbm [thread:$0]  %s429_s4, 64, %s870_s7, [#allocation4]  }
 0x30b   :  { %704 = dma.done.wait [#allocation4], 64  }
 0x30c   :  { %705 = vsyncadd [#allocation4], 4294967232 }
 0x30d   :  { %435 = vsyncpa [#allocation3], 1 }
 0x30e   :  { %436 = vsyncpa [#allocation6], 1 }
 0x30f   :  { %437 = vsyncpa [#allocation9], 1 }
 0x310   :  { %438 = vsyncpa [#allocation4], 1 }

</bundles_post_ra>
